<compile_context>
chip_gen: v7x
topology: tpu7x:2x2x1
jax: 0.10.0
libtpu: 0.0.40
codegen_flags: <defaults>
</compile_context>

<pallas_src>
import math

import jax
import jax.numpy as jnp
from jax import lax
from jax.experimental import pallas as pl
from jax.experimental.pallas import tpu as pltpu


# -------------------------- Pallas kernel --------------------------------- #
def _projection_head_kernel(x_ref, w1_ref, w2_ref, vec_ref, o_ref):
    """Fused forward pass for one batch tile.

    x_ref   : (tm, E) bf16 input tile
    w1_ref  : (E, P)  bf16 projection weight (transposed vs. torch [out,in])
    w2_ref  : (P, P)  bf16 fc weight (transposed)
    vec_ref : (4, P)  f32, rows = [b1, b2, gamma, beta]
    o_ref   : (tm, P) f32 output tile
    """
    x = x_ref[...]
    vecs = vec_ref[...]
    b1, b2 = vecs[0:1], vecs[1:2]
    gamma, beta = vecs[2:3], vecs[3:4]

    # projected = Linear(embedding_dim -> projection_dim); bf16 MXU, f32 accum
    projected = jnp.dot(x, w1_ref[...], preferred_element_type=jnp.float32) + b1

    # exact (erf-based) GELU in f32, matching nn.GELU() default.
    # (tanh approx would move this to the EUP slot on v5e if tolerance allowed)
    inv_sqrt2 = jnp.float32(1.0 / math.sqrt(2.0))
    h = 0.5 * projected * (1.0 + lax.erf(projected * inv_sqrt2))

    # fc = Linear(projection_dim -> projection_dim); bf16 MXU, f32 accum
    h = jnp.dot(h.astype(jnp.bfloat16), w2_ref[...],
                preferred_element_type=jnp.float32) + b2

    # dropout: identity in eval mode

    # residual add
    y = h + projected

    # LayerNorm over projection_dim, eps = 1e-5, all f32 (row-wise only; safe
    # even when the last ragged tile carries garbage rows)
    mean = jnp.mean(y, axis=-1, keepdims=True)
    centered = y - mean
    var = jnp.mean(centered * centered, axis=-1, keepdims=True)
    out = centered * lax.rsqrt(var + jnp.float32(1e-5)) * gamma + beta

    o_ref[...] = out.astype(o_ref.dtype)


# ----------------------------- wrapper ------------------------------------ #
def _round_up(n, m):
    return ((n + m - 1) // m) * m


def _choose_block_m(B):
    # Tiny batches: one grid step, no dead rows beyond sublane rounding.
    # Large batches: big tiles to amortize the ~0.35us per-step overhead.
    if B <= 512:
        return _round_up(B, 8)
    return 512


def projection_head_forward(x, params, *, block_m=None, core_parallel=False):
    """Fused ProjectionHead forward (eval mode).

    x             : [B, E] float array
    params        : dict with w1 [E,P], b1 [P], w2 [P,P], b2 [P], gamma [P], beta [P]
                    (weights in [in, out] layout)
    block_m       : batch rows per grid step (auto-sized if None)
    core_parallel : set True on v7x to shard the batch axis across both TensorCores
    """
    B, E = x.shape
    P = params["w1"].shape[1]
    assert P % 128 == 0, "projection_dim must be a multiple of 128 (lane-dense)"

    if block_m is None:
        block_m = _choose_block_m(B)
    # Never make the tile larger than the (sublane-rounded) batch.
    block_m = _round_up(min(block_m, _round_up(B, 8)), 8)
    grid_m = pl.cdiv(B, block_m)

    # Stream x and the weights in bf16; accumulation stays f32 inside the kernel.
    x_bf = x.astype(jnp.bfloat16)
    w1 = params["w1"].astype(jnp.bfloat16)
    w2 = params["w2"].astype(jnp.bfloat16)

    # Pack the four per-feature vectors into one lane-dense (4, P) operand.
    vecs = jnp.stack(
        [params["b1"], params["b2"], params["gamma"], params["beta"]]
    ).astype(jnp.float32)

    # Grid-invariant operands: constant index_map + single buffer.
    def resident(shape):
        return pl.BlockSpec(shape, lambda i: (0, 0), pipeline_mode=pl.Buffered(1))

    cost = pl.CostEstimate(
        flops=2 * B * (E * P + P * P),
        transcendentals=B * P,  # erf in the GELU
        bytes_accessed=(x_bf.size * 2 + w1.size * 2 + w2.size * 2
                        + vecs.size * 4 + B * P * 4),
    )

    semantics = (pltpu.CORE_PARALLEL,) if core_parallel else ("parallel",)

    out = pl.pallas_call(
        _projection_head_kernel,
        out_shape=jax.ShapeDtypeStruct((B, P), x.dtype),
        grid_spec=pltpu.PrefetchScalarGridSpec(
            num_scalar_prefetch=0,
            grid=(grid_m,),
            in_specs=[
                pl.BlockSpec((block_m, E), lambda i: (i, 0)),  # x tile (ragged OK)
                resident((E, P)),                              # w1
                resident((P, P)),                              # w2
                resident((4, P)),                              # b1/b2/gamma/beta
            ],
            out_specs=pl.BlockSpec((block_m, P), lambda i: (i, 0)),
        ),
        compiler_params=pltpu.CompilerParams(
            dimension_semantics=semantics,
            # vmem_limit_bytes intentionally left at the default: actual need at
            # these shapes (double-buffered x/out tiles + resident bf16 weights)
            # is well under the scoped default on every generation.
        ),
        cost_estimate=cost,
    )(x_bf, w1, w2, vecs)

    return out


def init_params(key, embedding_dim, projection_dim):
    """Deterministic synthetic parameters (PyTorch-style uniform init), f32."""
    k1, k2, k3, k4 = jax.random.split(key, 4)
    bound1 = 1.0 / math.sqrt(embedding_dim)
    bound2 = 1.0 / math.sqrt(projection_dim)
    return {
        # stored as [in, out] (transposed vs. torch's [out, in])
        "w1": jax.random.uniform(k1, (embedding_dim, projection_dim),
                                 jnp.float32, -bound1, bound1),
        "b1": jax.random.uniform(k2, (projection_dim,),
                                 jnp.float32, -bound1, bound1),
        "w2": jax.random.uniform(k3, (projection_dim, projection_dim),
                                 jnp.float32, -bound2, bound2),
        "b2": jax.random.uniform(k4, (projection_dim,),
                                 jnp.float32, -bound2, bound2),
        "gamma": jnp.ones((projection_dim,), jnp.float32),
        "beta": jnp.zeros((projection_dim,), jnp.float32),
    }


def reference_forward(x, params):
    """Pure-JAX reference of the PyTorch forward (eval mode), mirroring the
    kernel's bf16-operand / f32-accumulation matmul math."""
    xb = x.astype(jnp.bfloat16)
    w1 = params["w1"].astype(jnp.bfloat16)
    w2 = params["w2"].astype(jnp.bfloat16)
    projected = jnp.dot(xb, w1, preferred_element_type=jnp.float32) + params["b1"]
    h = 0.5 * projected * (1.0 + lax.erf(projected * jnp.float32(1.0 / math.sqrt(2.0))))
    h = jnp.dot(h.astype(jnp.bfloat16), w2,
                preferred_element_type=jnp.float32) + params["b2"]
    y = h + projected
    mean = jnp.mean(y, axis=-1, keepdims=True)
    var = jnp.mean((y - mean) ** 2, axis=-1, keepdims=True)
    y = (y - mean) * lax.rsqrt(var + jnp.float32(1e-5))
    return (y * params["gamma"] + params["beta"]).astype(x.dtype)


if __name__ == "__main__":
    # Small shapes consistent with the module: embedding_dim=32, projection_dim=128.
    # B=200 is not a multiple of 8*... anything fancy: the adaptive block_m turns
    # it into ONE grid step of 200 rows (no padding, no second pipeline step).
    B, E, P = 200, 32, 128

    key = jax.random.PRNGKey(0)
    kx, kp = jax.random.split(key)
    x = jax.random.normal(kx, (B, E), jnp.float32)
    params = init_params(kp, E, P)

    out = projection_head_forward(x, params)
    out = jax.block_until_ready(out)

    ref = reference_forward(x, params)
    assert out.shape == (B, P), f"bad shape {out.shape}"
    assert jnp.allclose(out, ref, atol=1e-2, rtol=1e-2), "mismatch vs reference"

    print("KERNEL_OK")
</pallas_src>

<mosaic_0001>
module attributes {stable_mosaic.version = 11 : i64} {
  func.func @_projection_head_kernel(%arg0: i32, %arg1: memref<200x32xbf16, #tpu.memory_space<vmem>>, %arg2: memref<32x128xbf16, #tpu.memory_space<vmem>>, %arg3: memref<128x128xbf16, #tpu.memory_space<vmem>>, %arg4: memref<4x128xf32, #tpu.memory_space<vmem>>, %arg5: memref<200x128xf32, #tpu.memory_space<vmem>>) attributes {dimension_semantics = [#tpu.dimension_semantics<parallel>], iteration_bounds = array<i64: 1>, scalar_prefetch = 0 : i64, scratch_operands = 0 : i64, tpu.core_type = #tpu.core_type<tc>, window_params = [{transform_indices = @transform_0, window_bounds = array<i64: 200, 32>}, {pipeline_mode = #tpu.pipeline_mode<synchronous>, transform_indices = @transform_1, window_bounds = array<i64: 32, 128>}, {pipeline_mode = #tpu.pipeline_mode<synchronous>, transform_indices = @transform_2, window_bounds = array<i64: 128, 128>}, {pipeline_mode = #tpu.pipeline_mode<synchronous>, transform_indices = @transform_3, window_bounds = array<i64: 4, 128>}, {transform_indices = @transform_4, window_bounds = array<i64: 200, 128>}]} {
    %c0 = arith.constant 0 : index
    %c0_0 = arith.constant 0 : index
    %0 = vector.load %arg1[%c0, %c0_0] : memref<200x32xbf16, #tpu.memory_space<vmem>>, vector<200x32xbf16>
    %c0_1 = arith.constant 0 : index
    %c0_2 = arith.constant 0 : index
    %1 = vector.load %arg4[%c0_1, %c0_2] : memref<4x128xf32, #tpu.memory_space<vmem>>, vector<4x128xf32>
    %2 = vector.extract_strided_slice %1 {offsets = [0, 0], sizes = [1, 128], strides = [1, 1]} : vector<4x128xf32> to vector<1x128xf32>
    %3 = vector.extract_strided_slice %1 {offsets = [1, 0], sizes = [1, 128], strides = [1, 1]} : vector<4x128xf32> to vector<1x128xf32>
    %4 = vector.extract_strided_slice %1 {offsets = [2, 0], sizes = [1, 128], strides = [1, 1]} : vector<4x128xf32> to vector<1x128xf32>
    %5 = vector.extract_strided_slice %1 {offsets = [3, 0], sizes = [1, 128], strides = [1, 1]} : vector<4x128xf32> to vector<1x128xf32>
    %c0_3 = arith.constant 0 : index
    %c0_4 = arith.constant 0 : index
    %6 = vector.load %arg2[%c0_3, %c0_4] : memref<32x128xbf16, #tpu.memory_space<vmem>>, vector<32x128xbf16>
    %cst = arith.constant dense<0.000000e+00> : vector<200x128xf32>
    %7 = tpu.matmul %0, %6, %cst {dimension_numbers = #tpu.dot_dimension_numbers<[1], [0], [0], [1], [0, 0, 1, 1], [], []>} : vector<200x32xbf16>, vector<32x128xbf16>, vector<200x128xf32> -> vector<200x128xf32>
    %8 = vector.broadcast %2 : vector<1x128xf32> to vector<200x128xf32>
    %9 = arith.addf %7, %8 : vector<200x128xf32>
    %cst_5 = arith.constant 5.000000e-01 : f32
    %10 = vector.broadcast %cst_5 : f32 to vector<200x128xf32>
    %11 = arith.mulf %10, %9 : vector<200x128xf32>
    %cst_6 = arith.constant 0.707106769 : f32
    %12 = vector.broadcast %cst_6 : f32 to vector<200x128xf32>
    %13 = arith.mulf %9, %12 : vector<200x128xf32>
    %14 = math.erf %13 : vector<200x128xf32>
    %cst_7 = arith.constant 1.000000e+00 : f32
    %15 = vector.broadcast %cst_7 : f32 to vector<200x128xf32>
    %16 = arith.addf %15, %14 : vector<200x128xf32>
    %17 = arith.mulf %11, %16 : vector<200x128xf32>
    %18 = arith.truncf %17 : vector<200x128xf32> to vector<200x128xbf16>
    %c0_8 = arith.constant 0 : index
    %c0_9 = arith.constant 0 : index
    %19 = vector.load %arg3[%c0_8, %c0_9] : memref<128x128xbf16, #tpu.memory_space<vmem>>, vector<128x128xbf16>
    %cst_10 = arith.constant dense<0.000000e+00> : vector<200x128xf32>
    %20 = tpu.matmul %18, %19, %cst_10 {dimension_numbers = #tpu.dot_dimension_numbers<[1], [0], [0], [1], [0, 0, 1, 1], [], []>} : vector<200x128xbf16>, vector<128x128xbf16>, vector<200x128xf32> -> vector<200x128xf32>
    %21 = vector.broadcast %3 : vector<1x128xf32> to vector<200x128xf32>
    %22 = arith.addf %20, %21 : vector<200x128xf32>
    %23 = arith.addf %22, %9 : vector<200x128xf32>
    %cst_11 = arith.constant dense<0.000000e+00> : vector<200xf32>
    %24 = vector.multi_reduction <add>, %23, %cst_11 [1] : vector<200x128xf32> to vector<200xf32>
    %25 = vector.shape_cast %24 : vector<200xf32> to vector<200x1xf32>
    %cst_12 = arith.constant 1.280000e+02 : f32
    %26 = vector.broadcast %cst_12 : f32 to vector<200x1xf32>
    %27 = arith.divf %25, %26 : vector<200x1xf32>
    %28 = vector.broadcast %27 : vector<200x1xf32> to vector<200x128xf32>
    %29 = arith.subf %23, %28 : vector<200x128xf32>
    %30 = arith.mulf %29, %29 : vector<200x128xf32>
    %cst_13 = arith.constant dense<0.000000e+00> : vector<200xf32>
    %31 = vector.multi_reduction <add>, %30, %cst_13 [1] : vector<200x128xf32> to vector<200xf32>
    %32 = vector.shape_cast %31 : vector<200xf32> to vector<200x1xf32>
    %cst_14 = arith.constant 1.280000e+02 : f32
    %33 = vector.broadcast %cst_14 : f32 to vector<200x1xf32>
    %34 = arith.divf %32, %33 : vector<200x1xf32>
    %cst_15 = arith.constant 9.99999974E-6 : f32
    %35 = vector.broadcast %cst_15 : f32 to vector<200x1xf32>
    %36 = arith.addf %34, %35 : vector<200x1xf32>
    %37 = math.rsqrt %36 : vector<200x1xf32>
    %38 = vector.broadcast %37 : vector<200x1xf32> to vector<200x128xf32>
    %39 = arith.mulf %29, %38 : vector<200x128xf32>
    %40 = vector.broadcast %4 : vector<1x128xf32> to vector<200x128xf32>
    %41 = arith.mulf %39, %40 : vector<200x128xf32>
    %42 = vector.broadcast %5 : vector<1x128xf32> to vector<200x128xf32>
    %43 = arith.addf %41, %42 : vector<200x128xf32>
    %c0_16 = arith.constant 0 : index
    %c0_17 = arith.constant 0 : index
    %44 = vector.load %arg5[%c0_16, %c0_17] : memref<200x128xf32, #tpu.memory_space<vmem>>, vector<200x128xf32>
    tpu.vector_store %arg5[%c0_16, %c0_17], %43 {strides = array<i32>} : memref<200x128xf32, #tpu.memory_space<vmem>>, vector<200x128xf32>,
    return
  }
  func.func @transform_0(%arg0: i32) -> (i32, i32) {
    %c0_i32 = arith.constant 0 : i32
    %c0_i32_0 = arith.constant 0 : i32
    return %arg0, %c0_i32 : i32, i32
  }
  func.func @transform_1(%arg0: i32) -> (i32, i32) {
    %c0_i32 = arith.constant 0 : i32
    %c0_i32_0 = arith.constant 0 : i32
    %c0_i32_1 = arith.constant 0 : i32
    return %c0_i32, %c0_i32_0 : i32, i32
  }
  func.func @transform_2(%arg0: i32) -> (i32, i32) {
    %c0_i32 = arith.constant 0 : i32
    %c0_i32_0 = arith.constant 0 : i32
    %c0_i32_1 = arith.constant 0 : i32
    return %c0_i32, %c0_i32_0 : i32, i32
  }
  func.func @transform_3(%arg0: i32) -> (i32, i32) {
    %c0_i32 = arith.constant 0 : i32
    %c0_i32_0 = arith.constant 0 : i32
    %c0_i32_1 = arith.constant 0 : i32
    return %c0_i32, %c0_i32_0 : i32, i32
  }
  func.func @transform_4(%arg0: i32) -> (i32, i32) {
    %c0_i32 = arith.constant 0 : i32
    %c0_i32_0 = arith.constant 0 : i32
    return %arg0, %c0_i32 : i32, i32
  }
}

</mosaic_0001>

<bundles_post_ra>
// kernel: tpu_custom_call.1
= control target key start
LH: loop header
LB: loop body
LE: loop exit
PB: predicated region body
PF: predicated region fallthrough
CT: control target
= control target key end

     0   :  { %v1411_v1 = vmov 0.0   ;;  %vm1412_vm0 = vmmov 0   ;;  %vm128_vm1 = vcmask 261120   ;;  %s2079_s0 = inlined_call_operand.vmem [shape: bf16[200,32], index: 0, kind: input, shape index: {}]   ;;  %s2080_s1 = inlined_call_operand.vmem [shape: bf16[32,128], index: 1, kind: input, shape index: {}]   ;;  %s2081_s2 = inlined_call_operand.vmem [shape: bf16[128,128], index: 2, kind: input, shape index: {}]   ;;  %s2082_s3 = inlined_call_operand.vmem [shape: f32[4,128], index: 3, kind: input, shape index: {}]   ;;  %s2083_s4 = inlined_call_operand.hbm [shape: f32[200,128], index: 4, kind: output, shape index: {}]  }
   0x1   :  { %v1263_v0 = vld [vmem:[%s2080_s1] sm:$0xff]   ;;  %1118 = vmatprep.subr.bf16.mxu0 %v1411_v1  ;;  %1242 = vmatprep.subr.bf16.mxu1 %v1411_v1  ;;  %v1264_v2 = vld [vmem:[%s2080_s1 + $0x8] sm:$0xff]   ;;  %v1267_v7 = vld [vmem:[%s2079_s0 + $0x10] sm:$0xff]  }
   0x2   :  { %1119 = vmatpush3.bf16.msra.mxu0 %v1263_v0  ;;  %1122 = vmatprep.mubr.msk.bf16.mxu0 %vm1412_vm0, %v1411_v1  ;;  %v1265_v3 = vld [vmem:[%s2079_s0] sm:$0xff]   ;;  %v1266_v4 = vld [vmem:[%s2079_s0 + $0x8] sm:$0xff]  }
   0x3   :  { %1120 = vmatprep.subr.bf16.mxu0 %v1411_v1  ;;  %1194 = vmatprep.mubr.msk.bf16.mxu1 %vm1412_vm0, %v1411_v1  ;;  %v1278_v5 = vld [vmem:[%s2081_s2] sm:$0xff]   ;;  %v1279_v6 = vld [vmem:[%s2081_s2 + $0x8] sm:$0xff]  }
   0x4   :  { %1250 = vmatpush3.bf16.msra.mxu1 %v1278_v5 }
   0x5   :  { %1243 = vmatprep.subr.bf16.mxu1 %v1411_v1 }
   0x6   :  { %1121 = vmatpush3.bf16.msra.mxu0 %v1264_v2 }
   0x7   :  { %1174 = vmatprep.subr.bf16.mxu0 %v1411_v1 }
   0x8   :  { %1251 = vmatpush3.bf16.msra.mxu1 %v1279_v6 }
   0x9   :  { %1123 = vmatmul.mubr.msk.bf16.vlgmr.msra.gmra.mrb[0].mxu0 %vm128_vm1, %v1265_v3 }
   0xa   :  { %1126 = vmatprep.mubr.msk.bf16.mxu0 %vm1412_vm0, %v1411_v1  ;;  %1175 = vmatpush3.bf16.msra.mxu0 %v1278_v5 }
   0xb   :  { %1176 = vmatprep.subr.bf16.mxu0 %v1411_v1 }
  0x11   :  { %1127 = vmatmul.mubr.msk.bf16.gmra.mrb[4].mxu0 %vm128_vm1, %v1266_v4 }
  0x12   :  { %1130 = vmatprep.mubr.msk.bf16.mxu0 %vm1412_vm0, %v1411_v1 }
  0x13   :  { %9 = vsyncpa [#allocation3], 0  ;;  %1177 = vmatpush3.bf16.msra.mxu0 %v1279_v6  ;;  %v1280_v8 = vld [vmem:[%s2081_s2 + $0x10] sm:$0xff]   ;;  %1244 = vmatprep.subr.bf16.mxu1 %v1411_v1  ;;  %v1268_v9 = vld [vmem:[%s2079_s0 + $0x18] sm:$0xff]   ;;  %v49_v24 = vlaneseq }
  0x14   :  { %1178 = vmatprep.subr.bf16.mxu0 %v1411_v1  ;;  %1252 = vmatpush3.bf16.msra.mxu1 %v1280_v8  ;;  %v1269_v10 = vld [vmem:[%s2079_s0 + $0x20] sm:$0xff]   ;;  %v1270_v11 = vld [vmem:[%s2079_s0 + $0x28] sm:$0xff]   ;;  %v1271_v12 = vld [vmem:[%s2079_s0 + $0x30] sm:$0xff]  }
  0x15   :  { %1245 = vmatprep.subr.bf16.mxu1 %v1411_v1  ;;  %v1272_v13 = vld [vmem:[%s2079_s0 + $0x38] sm:$0xff]   ;;  %v1273_v14 = vld [vmem:[%s2079_s0 + $0x40] sm:$0xff]   ;;  %v1274_v15 = vld [vmem:[%s2079_s0 + $0x48] sm:$0xff]   ;;  %v1571_v25 = vshrl.u32 %v49_v24, 7 }
  0x16   :  { %v1275_v16 = vld [vmem:[%s2079_s0 + $0x50] sm:$0xff]   ;;  %v1276_v17 = vld [vmem:[%s2079_s0 + $0x58] sm:$0xff]   ;;  %v1282_v19 = vld [vmem:[%s2081_s2 + $0x20] sm:$0xff]  }
  0x17   :  { %1179 = vmatpush3.bf16.msra.mxu0 %v1280_v8  ;;  %v1281_v18 = vld [vmem:[%s2081_s2 + $0x18] sm:$0xff]   ;;  %v1277_v20 = vld [vmem:[%s2079_s0 + $0x60] ss:$0 sps:$4 sm:$0xff]   ;;  %v1283_v21 = vld [vmem:[%s2081_s2 + $0x28] sm:$0xff]   ;;  %v51_v26 = vsub.s32 0, %v1571_v25 }
  0x18   :  { %1180 = vmatprep.subr.bf16.mxu0 %v1411_v1  ;;  %1253 = vmatpush3.bf16.msra.mxu1 %v1281_v18  ;;  %v1284_v22 = vld [vmem:[%s2081_s2 + $0x30] sm:$0xff]   ;;  %v1285_v23 = vld [vmem:[%s2081_s2 + $0x38] sm:$0xff]   ;;  %v1577_v27 = vld [vmem:[%s2082_s3] sm:$0xf] }
  0x19   :  { %1131 = vmatmul.mubr.msk.bf16.gmra.mrb[8].mxu0 %vm128_vm1, %v1267_v7  ;;  %1246 = vmatprep.subr.bf16.mxu1 %v1411_v1  ;;  %v1580_v28 = vrot.slane %v1577_v27, %v51_v26 }
  0x1a   :  { %1134 = vmatprep.mubr.msk.bf16.mxu0 %vm1412_vm0, %v1411_v1 }
  0x1b   :  { %1181 = vmatpush3.bf16.msra.mxu0 %v1281_v18 }
  0x1c   :  { %1182 = vmatprep.subr.bf16.mxu0 %v1411_v1  ;;  %1254 = vmatpush3.bf16.msra.mxu1 %v1282_v19 }
  0x1d   :  { %1247 = vmatprep.subr.bf16.mxu1 %v1411_v1 }
  0x1f   :  { %1183 = vmatpush3.bf16.msra.mxu0 %v1282_v19 }
  0x20   :  { %1184 = vmatprep.subr.bf16.mxu0 %v1411_v1  ;;  %1255 = vmatpush3.bf16.msra.mxu1 %v1283_v21 }
  0x21   :  { %1135 = vmatmul.mubr.msk.bf16.gmra.mrb[12].mxu0 %vm128_vm1, %v1268_v9  ;;  %1248 = vmatprep.subr.bf16.mxu1 %v1411_v1 }
  0x22   :  { %1138 = vmatprep.mubr.msk.bf16.mxu0 %vm1412_vm0, %v1411_v1 }
  0x23   :  { %1185 = vmatpush3.bf16.msra.mxu0 %v1283_v21 }
  0x24   :  { %1186 = vmatprep.subr.bf16.mxu0 %v1411_v1  ;;  %1256 = vmatpush3.bf16.msra.mxu1 %v1284_v22 }
  0x25   :  { %1249 = vmatprep.subr.bf16.mxu1 %v1411_v1 }
  0x27   :  { %1187 = vmatpush3.bf16.msra.mxu0 %v1284_v22 }
  0x28   :  { %1188 = vmatprep.subr.bf16.mxu0 %v1411_v1  ;;  %1257 = vmatpush3.bf16.msra.mxu1 %v1285_v23 }
  0x29   :  { %1139 = vmatmul.mubr.msk.bf16.gmra.mrb[16].mxu0 %vm128_vm1, %v1269_v10 }
  0x2a   :  { %1142 = vmatprep.mubr.msk.bf16.mxu0 %vm1412_vm0, %v1411_v1 }
  0x2b   :  { %1189 = vmatpush3.bf16.msra.mxu0 %v1285_v23 }
  0x31   :  { %1143 = vmatmul.mubr.msk.bf16.gmra.mrb[20].mxu0 %vm128_vm1, %v1270_v11 }
  0x32   :  { %1146 = vmatprep.mubr.msk.bf16.mxu0 %vm1412_vm0, %v1411_v1 }
  0x39   :  { %1147 = vmatmul.mubr.msk.bf16.gmra.mrb[24].mxu0 %vm128_vm1, %v1271_v12 }
  0x3a   :  { %1150 = vmatprep.mubr.msk.bf16.mxu0 %vm1412_vm0, %v1411_v1 }
  0x41   :  { %1151 = vmatmul.mubr.msk.bf16.gmra.mrb[28].mxu0 %vm128_vm1, %v1272_v13 }
  0x42   :  { %1154 = vmatprep.mubr.msk.bf16.mxu0 %vm1412_vm0, %v1411_v1 }
  0x49   :  { %1155 = vmatmul.mubr.msk.bf16.gmra.mrb[32].mxu0 %vm128_vm1, %v1273_v14 }
  0x4a   :  { %1158 = vmatprep.mubr.msk.bf16.mxu0 %vm1412_vm0, %v1411_v1 }
  0x51   :  { %1159 = vmatmul.mubr.msk.bf16.gmra.mrb[36].mxu0 %vm128_vm1, %v1274_v15 }
  0x52   :  { %1162 = vmatprep.mubr.msk.bf16.mxu0 %vm1412_vm0, %v1411_v1 }
  0x59   :  { %1163 = vmatmul.mubr.msk.bf16.gmra.mrb[40].mxu0 %vm128_vm1, %v1275_v16 }
  0x5a   :  { %1166 = vmatprep.mubr.msk.bf16.mxu0 %vm1412_vm0, %v1411_v1 }
  0x61   :  { %1167 = vmatmul.mubr.msk.bf16.gmra.mrb[44].mxu0 %vm128_vm1, %v1276_v17 }
  0x62   :  { %1170 = vmatprep.mubr.msk.bf16.mxu0 %vm1412_vm0, %v1411_v1 }
  0x69   :  { %1171 = vmatmul.mubr.msk.bf16.gmra.mrb[48].mxu0 %vm128_vm1, %v1277_v20 }
  0x6a   :  { %1190 = vmatprep.mubr.msk.bf16.mxu0 %vm1412_vm0, %v1411_v1 }
  0xdc   :  { %v202_v29 = vpop.f32.mrb[0].mxu0 }
  0xdd   :  { %v1583_v30 = vadd.f32 %v202_v29, %v1580_v28  ;;  %v1124_v31 = vpop.f32.mrb[1].mxu0 }
  0xde   :  { %v205_v32 = vpop.f32.mrb[2].mxu0 }
  0xdf   :  { %v329_v33 = vmul.f32 0.70710677, %v1583_v30  ;;  %v1587_v34 = vadd.f32 %v205_v32, %v1580_v28  ;;  %v1125_v35 = vpop.f32.mrb[3].mxu0  ;;  %v304_v51 = vmul.f32 0.5, %v1583_v30 }
  0xe1   :  { %1286 = verf.f32 %v329_v33  ;;  %v330_v36 = vmul.f32 0.70710677, %v1587_v34  ;;  %v305_v52 = vmul.f32 0.5, %v1587_v34 }
  0xe3   :  { %1288 = verf.f32 %v330_v36 }
  0xe4   :  { %v210_v37 = vpop.f32.mrb[4].mxu0 }
  0xe5   :  { %v1591_v38 = vadd.f32 %v210_v37, %v1580_v28  ;;  %v1128_v39 = vpop.f32.mrb[5].mxu0 }
  0xe6   :  { %v213_v40 = vpop.f32.mrb[6].mxu0 }
  0xe7   :  { %v331_v41 = vmul.f32 0.70710677, %v1591_v38  ;;  %v1595_v42 = vadd.f32 %v213_v40, %v1580_v28  ;;  %v1129_v43 = vpop.f32.mrb[7].mxu0  ;;  %v306_v5 = vmul.f32 0.5, %v1591_v38 }
  0xe9   :  { %1290 = verf.f32 %v331_v41  ;;  %v332_v44 = vmul.f32 0.70710677, %v1595_v42  ;;  %v307_v6 = vmul.f32 0.5, %v1595_v42 }
  0xeb   :  { %v1287_v45 = vpop.eup %1286  ;;  %1292 = verf.f32 %v332_v44 }
  0xec   :  { %v379_v46 = vadd.f32 1.0, %v1287_v45  ;;  %v218_v47 = vpop.f32.mrb[8].mxu0 }
  0xed   :  { %v1289_v48 = vpop.eup %1288  ;;  %v1599_v49 = vadd.f32 %v218_v47, %v1580_v28  ;;  %v1132_v50 = vpop.f32.mrb[9].mxu0 }
  0xee   :  { %v380_v53 = vadd.f32 1.0, %v1289_v48  ;;  %v221_v54 = vpop.f32.mrb[10].mxu0  ;;  %v404_v58 = vmul.f32 %v379_v46, %v304_v51 }
  0xef   :  { %v333_v55 = vmul.f32 0.70710677, %v1599_v49  ;;  %v1605_v56 = vadd.f32 %v221_v54, %v1580_v28  ;;  %v1133_v57 = vpop.f32.mrb[11].mxu0  ;;  %v308_v22 = vmul.f32 0.5, %v1599_v49 }
  0xf0   :  { %v405_v59 = vmul.f32 %v380_v53, %v305_v52 }
  0xf1   :  { %1294 = verf.f32 %v333_v55  ;;  %v334_v60 = vmul.f32 0.70710677, %v1605_v56  ;;  %v309_v23 = vmul.f32 0.5, %v1605_v56 }
  0xf2   :  { %v429_v61 = vpack.c.bf16 %v405_v59, %v404_v58 }
  0xf3   :  { %v1291_v62 = vpop.eup %1290  ;;  %1296 = verf.f32 %v334_v60 }
  0xf4   :  { %v226_v63 = vpop.f32.mrb[12].mxu0  ;;  %1191 = vmatmul.mubr.bf16.vlgmr.msra.gmra.mrb[52].mxu0 %v429_v61  ;;  %v381_v0 = vadd.f32 1.0, %v1291_v62 }
  0xf5   :  { %v1293_v2 = vpop.eup %1292  ;;  %v1609_v3 = vadd.f32 %v226_v63, %v1580_v28  ;;  %v1136_v4 = vpop.f32.mrb[13].mxu0 }
  0xf6   :  { %v229_v7 = vpop.f32.mrb[14].mxu0  ;;  %v382_v8 = vadd.f32 1.0, %v1293_v2  ;;  %v406_v12 = vmul.f32 %v381_v0, %v306_v5 }
  0xf7   :  { %v335_v9 = vmul.f32 0.70710677, %v1609_v3  ;;  %v1615_v10 = vadd.f32 %v229_v7, %v1580_v28  ;;  %v1137_v11 = vpop.f32.mrb[15].mxu0  ;;  %v310_v46 = vmul.f32 0.5, %v1609_v3 }
  0xf8   :  { %v407_v13 = vmul.f32 %v382_v8, %v307_v6 }
  0xf9   :  { %1298 = verf.f32 %v335_v9  ;;  %v336_v14 = vmul.f32 0.70710677, %v1615_v10  ;;  %v311_v47 = vmul.f32 0.5, %v1615_v10 }
  0xfa   :  { %v430_v15 = vpack.c.bf16 %v407_v13, %v406_v12 }
  0xfb   :  { %v1295_v16 = vpop.eup %1294  ;;  %1300 = verf.f32 %v336_v14 }
  0xfc   :  { %v234_v17 = vpop.f32.mrb[16].mxu0  ;;  %1195 = vmatmul.mubr.bf16.vlgmr.msra.gmra.mrb[0].mxu1 %v430_v15  ;;  %v383_v18 = vadd.f32 1.0, %v1295_v16 }
  0xfd   :  { %v1297_v19 = vpop.eup %1296  ;;  %v1619_v20 = vadd.f32 %v234_v17, %v1580_v28  ;;  %v1140_v21 = vpop.f32.mrb[17].mxu0  ;;  %1198 = vmatprep.mubr.msk.bf16.mxu1 %vm1412_vm0, %v1411_v1 }
  0xfe   :  { %v237_v24 = vpop.f32.mrb[18].mxu0  ;;  %v384_v26 = vadd.f32 1.0, %v1297_v19  ;;  %v408_v33 = vmul.f32 %v383_v18, %v308_v22 }
  0xff   :  { %v337_v29 = vmul.f32 0.70710677, %v1619_v20  ;;  %v1627_v31 = vadd.f32 %v237_v24, %v1580_v28  ;;  %v1141_v32 = vpop.f32.mrb[19].mxu0  ;;  %v312_v2 = vmul.f32 0.5, %v1619_v20 }
 0x100   :  { %v409_v35 = vmul.f32 %v384_v26, %v309_v23 }
 0x101   :  { %1302 = verf.f32 %v337_v29  ;;  %v338_v36 = vmul.f32 0.70710677, %v1627_v31  ;;  %v313_v4 = vmul.f32 0.5, %v1627_v31 }
 0x102   :  { %v431_v37 = vpack.c.bf16 %v409_v35, %v408_v33 }
 0x103   :  { %v1299_v39 = vpop.eup %1298  ;;  %1304 = verf.f32 %v338_v36 }
 0x104   :  { %v242_v40 = vpop.f32.mrb[20].mxu0  ;;  %1199 = vmatmul.mubr.bf16.gmra.mrb[4].mxu1 %v431_v37  ;;  %v385_v41 = vadd.f32 1.0, %v1299_v39 }
 0x105   :  { %v1301_v43 = vpop.eup %1300  ;;  %v1631_v44 = vadd.f32 %v242_v40, %v1580_v28  ;;  %v1144_v45 = vpop.f32.mrb[21].mxu0  ;;  %1202 = vmatprep.mubr.msk.bf16.mxu1 %vm1412_vm0, %v1411_v1 }
 0x106   :  { %v245_v48 = vpop.f32.mrb[22].mxu0  ;;  %v386_v50 = vadd.f32 1.0, %v1301_v43  ;;  %v410_v54 = vmul.f32 %v385_v41, %v310_v46 }
 0x107   :  { %v339_v51 = vmul.f32 0.70710677, %v1631_v44  ;;  %v1639_v52 = vadd.f32 %v245_v48, %v1580_v28  ;;  %v1145_v53 = vpop.f32.mrb[23].mxu0  ;;  %v314_v22 = vmul.f32 0.5, %v1631_v44 }
 0x108   :  { %v411_v55 = vmul.f32 %v386_v50, %v311_v47 }
 0x109   :  { %1306 = verf.f32 %v339_v51  ;;  %v340_v57 = vmul.f32 0.70710677, %v1639_v52  ;;  %v315_v23 = vmul.f32 0.5, %v1639_v52 }
 0x10a   :  { %v432_v58 = vpack.c.bf16 %v411_v55, %v410_v54 }
 0x10b   :  { %v1303_v59 = vpop.eup %1302  ;;  %1308 = verf.f32 %v340_v57 }
 0x10c   :  { %v250_v60 = vpop.f32.mrb[24].mxu0  ;;  %1203 = vmatmul.mubr.bf16.gmra.mrb[8].mxu1 %v432_v58  ;;  %v387_v61 = vadd.f32 1.0, %v1303_v59 }
 0x10d   :  { %v1305_v62 = vpop.eup %1304  ;;  %v1643_v63 = vadd.f32 %v250_v60, %v1580_v28  ;;  %v1148_v0 = vpop.f32.mrb[25].mxu0  ;;  %1206 = vmatprep.mubr.msk.bf16.mxu1 %vm1412_vm0, %v1411_v1 }
 0x10e   :  { %v253_v5 = vpop.f32.mrb[26].mxu0  ;;  %v388_v6 = vadd.f32 1.0, %v1305_v62  ;;  %v412_v11 = vmul.f32 %v387_v61, %v312_v2 }
 0x10f   :  { %v341_v7 = vmul.f32 0.70710677, %v1643_v63  ;;  %v1651_v8 = vadd.f32 %v253_v5, %v1580_v28  ;;  %v1149_v9 = vpop.f32.mrb[27].mxu0  ;;  %v316_v48 = vmul.f32 0.5, %v1643_v63 }
 0x110   :  { %v413_v12 = vmul.f32 %v388_v6, %v313_v4 }
 0x111   :  { %1310 = verf.f32 %v341_v7  ;;  %v342_v13 = vmul.f32 0.70710677, %v1651_v8  ;;  %v317_v50 = vmul.f32 0.5, %v1651_v8 }
 0x112   :  { %v433_v14 = vpack.c.bf16 %v413_v12, %v412_v11 }
 0x113   :  { %v1307_v15 = vpop.eup %1306  ;;  %1312 = verf.f32 %v342_v13 }
 0x114   :  { %v258_v16 = vpop.f32.mrb[28].mxu0  ;;  %1207 = vmatmul.mubr.bf16.gmra.mrb[12].mxu1 %v433_v14  ;;  %v389_v17 = vadd.f32 1.0, %v1307_v15 }
 0x115   :  { %v1309_v18 = vpop.eup %1308  ;;  %v1655_v19 = vadd.f32 %v258_v16, %v1580_v28  ;;  %v1152_v21 = vpop.f32.mrb[29].mxu0  ;;  %1210 = vmatprep.mubr.msk.bf16.mxu1 %vm1412_vm0, %v1411_v1 }
 0x116   :  { %v261_v24 = vpop.f32.mrb[30].mxu0  ;;  %v390_v26 = vadd.f32 1.0, %v1309_v18  ;;  %v414_v35 = vmul.f32 %v389_v17, %v314_v22 }
 0x117   :  { %v343_v29 = vmul.f32 0.70710677, %v1655_v19  ;;  %v1663_v32 = vadd.f32 %v261_v24, %v1580_v28  ;;  %v1153_v33 = vpop.f32.mrb[31].mxu0  ;;  %v318_v7 = vmul.f32 0.5, %v1655_v19 }
 0x118   :  { %v415_v36 = vmul.f32 %v390_v26, %v315_v23 }
 0x119   :  { %1314 = verf.f32 %v343_v29  ;;  %v344_v37 = vmul.f32 0.70710677, %v1663_v32  ;;  %v319_v9 = vmul.f32 0.5, %v1663_v32 }
 0x11a   :  { %v434_v39 = vpack.c.bf16 %v415_v36, %v414_v35 }
 0x11b   :  { %v1311_v40 = vpop.eup %1310  ;;  %1316 = verf.f32 %v344_v37 }
 0x11c   :  { %v266_v41 = vpop.f32.mrb[32].mxu0  ;;  %1211 = vmatmul.mubr.bf16.gmra.mrb[16].mxu1 %v434_v39  ;;  %v391_v43 = vadd.f32 1.0, %v1311_v40 }
 0x11d   :  { %v1313_v45 = vpop.eup %1312  ;;  %v1667_v46 = vadd.f32 %v266_v41, %v1580_v28  ;;  %v1156_v47 = vpop.f32.mrb[33].mxu0  ;;  %1214 = vmatprep.mubr.msk.bf16.mxu1 %vm1412_vm0, %v1411_v1 }
 0x11e   :  { %v269_v51 = vpop.f32.mrb[34].mxu0  ;;  %v392_v53 = vadd.f32 1.0, %v1313_v45  ;;  %v416_v58 = vmul.f32 %v391_v43, %v316_v48 }
 0x11f   :  { %v345_v54 = vmul.f32 0.70710677, %v1667_v46  ;;  %v1675_v55 = vadd.f32 %v269_v51, %v1580_v28  ;;  %v1157_v57 = vpop.f32.mrb[35].mxu0  ;;  %v320_v35 = vmul.f32 0.5, %v1667_v46 }
 0x120   :  { %v417_v59 = vmul.f32 %v392_v53, %v317_v50 }
 0x121   :  { %1318 = verf.f32 %v345_v54  ;;  %v346_v60 = vmul.f32 0.70710677, %v1675_v55  ;;  %v321_v36 = vmul.f32 0.5, %v1675_v55 }
 0x122   :  { %v435_v61 = vpack.c.bf16 %v417_v59, %v416_v58 }
 0x123   :  { %v1315_v62 = vpop.eup %1314  ;;  %1320 = verf.f32 %v346_v60 }
 0x124   :  { %v274_v0 = vpop.f32.mrb[36].mxu0  ;;  %1215 = vmatmul.mubr.bf16.gmra.mrb[20].mxu1 %v435_v61  ;;  %v393_v2 = vadd.f32 1.0, %v1315_v62 }
 0x125   :  { %v1317_v4 = vpop.eup %1316  ;;  %v1679_v5 = vadd.f32 %v274_v0, %v1580_v28  ;;  %v1160_v6 = vpop.f32.mrb[37].mxu0  ;;  %1218 = vmatprep.mubr.msk.bf16.mxu1 %vm1412_vm0, %v1411_v1 }
 0x126   :  { %v277_v11 = vpop.f32.mrb[38].mxu0  ;;  %v394_v12 = vadd.f32 1.0, %v1317_v4  ;;  %v418_v16 = vmul.f32 %v393_v2, %v318_v7 }
 0x127   :  { %v347_v13 = vmul.f32 0.70710677, %v1679_v5  ;;  %v1687_v14 = vadd.f32 %v277_v11, %v1580_v28  ;;  %v1161_v15 = vpop.f32.mrb[39].mxu0  ;;  %v322_v60 = vmul.f32 0.5, %v1679_v5 }
 0x128   :  { %v419_v17 = vmul.f32 %v394_v12, %v319_v9 }
 0x129   :  { %1322 = verf.f32 %v347_v13  ;;  %v348_v18 = vmul.f32 0.70710677, %v1687_v14  ;;  %v323_v61 = vmul.f32 0.5, %v1687_v14 }
 0x12a   :  { %v436_v21 = vpack.c.bf16 %v419_v17, %v418_v16 }
 0x12b   :  { %v1319_v22 = vpop.eup %1318  ;;  %1324 = verf.f32 %v348_v18 }
 0x12c   :  { %v282_v23 = vpop.f32.mrb[40].mxu0  ;;  %1219 = vmatmul.mubr.bf16.gmra.mrb[24].mxu1 %v436_v21  ;;  %v395_v24 = vadd.f32 1.0, %v1319_v22 }
 0x12d   :  { %v1321_v26 = vpop.eup %1320  ;;  %v1691_v29 = vadd.f32 %v282_v23, %v1580_v28  ;;  %v1164_v33 = vpop.f32.mrb[41].mxu0  ;;  %1222 = vmatprep.mubr.msk.bf16.mxu1 %vm1412_vm0, %v1411_v1 }
 0x12e   :  { %v285_v37 = vpop.f32.mrb[42].mxu0  ;;  %v396_v39 = vadd.f32 1.0, %v1321_v26  ;;  %v420_v45 = vmul.f32 %v395_v24, %v320_v35 }
 0x12f   :  { %v349_v40 = vmul.f32 0.70710677, %v1691_v29  ;;  %v1699_v41 = vadd.f32 %v285_v37, %v1580_v28  ;;  %v1165_v43 = vpop.f32.mrb[43].mxu0  ;;  %v324_v22 = vmul.f32 0.5, %v1691_v29 }
 0x130   :  { %v421_v47 = vmul.f32 %v396_v39, %v321_v36 }
 0x131   :  { %1326 = verf.f32 %v349_v40  ;;  %v350_v48 = vmul.f32 0.70710677, %v1699_v41  ;;  %v325_v23 = vmul.f32 0.5, %v1699_v41 }
 0x132   :  { %v437_v50 = vpack.c.bf16 %v421_v47, %v420_v45 }
 0x133   :  { %v1323_v51 = vpop.eup %1322  ;;  %1328 = verf.f32 %v350_v48 }
 0x134   :  { %v290_v53 = vpop.f32.mrb[44].mxu0  ;;  %1223 = vmatmul.mubr.bf16.gmra.mrb[28].mxu1 %v437_v50  ;;  %v397_v54 = vadd.f32 1.0, %v1323_v51 }
 0x135   :  { %v1325_v57 = vpop.eup %1324  ;;  %v1703_v58 = vadd.f32 %v290_v53, %v1580_v28  ;;  %v1168_v59 = vpop.f32.mrb[45].mxu0  ;;  %1226 = vmatprep.mubr.msk.bf16.mxu1 %vm1412_vm0, %v1411_v1 }
 0x136   :  { %v293_v62 = vpop.f32.mrb[46].mxu0  ;;  %v398_v0 = vadd.f32 1.0, %v1325_v57  ;;  %v422_v7 = vmul.f32 %v397_v54, %v322_v60 }
 0x137   :  { %v351_v2 = vmul.f32 0.70710677, %v1703_v58  ;;  %v1711_v4 = vadd.f32 %v293_v62, %v1580_v28  ;;  %v1169_v6 = vpop.f32.mrb[47].mxu0  ;;  %v326_v45 = vmul.f32 0.5, %v1703_v58  ;;  %v460_v62 = vsub.s32 1, %v1571_v25 }
 0x138   :  { %v423_v9 = vmul.f32 %v398_v0, %v323_v61 }
 0x139   :  { %1330 = verf.f32 %v351_v2  ;;  %v352_v11 = vmul.f32 0.70710677, %v1711_v4  ;;  %v327_v47 = vmul.f32 0.5, %v1711_v4  ;;  %v1731_v0 = vrot.slane %v1577_v27, %v460_v62 }
 0x13a   :  { %v438_v12 = vpack.c.bf16 %v423_v9, %v422_v7 }
 0x13b   :  { %v1327_v13 = vpop.eup %1326  ;;  %1332 = verf.f32 %v352_v11 }
 0x13c   :  { %v298_v15 = vpop.f32.mrb[48].mxu0  ;;  %1227 = vmatmul.mubr.bf16.gmra.mrb[32].mxu1 %v438_v12  ;;  %v399_v16 = vadd.f32 1.0, %v1327_v13 }
 0x13d   :  { %v1329_v17 = vpop.eup %1328  ;;  %v1715_v18 = vadd.f32 %v298_v15, %v1580_v28  ;;  %v1172_v21 = vpop.f32.mrb[49].mxu0  ;;  %1230 = vmatprep.mubr.msk.bf16.mxu1 %vm1412_vm0, %v1411_v1 }
 0x13e   :  { %v301_v24 = vpop.f32.mrb[50].mxu0  ;;  %v400_v26 = vadd.f32 1.0, %v1329_v17  ;;  %v424_v36 = vmul.f32 %v399_v16, %v324_v22 }
 0x13f   :  { %v353_v33 = vmul.f32 0.70710677, %v1715_v18  ;;  %v1173_v35 = vpop.f32.mrb[51].mxu0  ;;  %v328_v57 = vmul.f32 0.5, %v1715_v18 }
 0x140   :  { %v425_v37 = vmul.f32 %v400_v26, %v325_v23 }
 0x141   :  { %1334 = verf.f32 %v353_v33 }
 0x142   :  { %v439_v39 = vpack.c.bf16 %v425_v37, %v424_v36 }
 0x143   :  { %v1331_v40 = vpop.eup %1330 }
 0x144   :  { %1231 = vmatmul.mubr.bf16.gmra.mrb[36].mxu1 %v439_v39  ;;  %v401_v28 = vadd.f32 1.0, %v1331_v40 }
 0x145   :  { %v1333_v43 = vpop.eup %1332  ;;  %1234 = vmatprep.mubr.msk.bf16.mxu1 %vm1412_vm0, %v1411_v1 }
 0x146   :  { %v402_v48 = vadd.f32 1.0, %v1333_v43  ;;  %v426_v50 = vmul.f32 %v401_v28, %v326_v45 }
 0x148   :  { %v427_v51 = vmul.f32 %v402_v48, %v327_v47 }
 0x14a   :  { %v440_v53 = vpack.c.bf16 %v427_v51, %v426_v50 }
 0x14b   :  { %v1335_v54 = vpop.eup %1334 }
 0x14c   :  { %1235 = vmatmul.mubr.bf16.gmra.mrb[40].mxu1 %v440_v53  ;;  %v403_v59 = vadd.f32 1.0, %v1335_v54 }
 0x14d   :  { %1238 = vmatprep.mubr.msk.bf16.mxu1 %vm1412_vm0, %v1411_v1 }
 0x14e   :  { %v428_v60 = vmul.f32 %v403_v59, %v328_v57 }
 0x150   :  { %v441_v61 = vpack.c.bf16 %v428_v60, %v428_v60 }
 0x154   :  { %1239 = vmatmul.mubr.bf16.gmra.mrb[44].mxu1 %v441_v61 }
 0x1c7   :  { %v544_v2 = vpop.f32.mrb[52].mxu0 }
 0x1c8   :  { %v545_v6 = vadd.f32 %v544_v2, %v1731_v0  ;;  %v1192_v7 = vpop.f32.mrb[53].mxu0 }
 0x1c9   :  { %v547_v9 = vpop.f32.mrb[54].mxu0 }
 0x1ca   :  { %v548_v11 = vadd.f32 %v547_v9, %v1731_v0  ;;  %v1193_v12 = vpop.f32.mrb[55].mxu0  ;;  %v1736_v13 = vadd.f32 %v545_v6, %v1583_v30 }
 0x1cc   :  { %671 = vadd.xlane.f32.xlu0 %v1736_v13  ;;  %v1740_v1 = vadd.f32 %v548_v11, %v1587_v34 }
 0x1cf   :  { %v552_v15 = vpop.f32.mrb[0].mxu1 }
 0x1d0   :  { %v553_v27 = vadd.f32 %v552_v15, %v1731_v0  ;;  %v1196_v16 = vpop.f32.mrb[1].mxu1  ;;  %673 = vadd.xlane.f32.xlu0 %v1740_v1 }
 0x1d1   :  { %v555_v17 = vpop.f32.mrb[2].mxu1 }
 0x1d2   :  { %v556_v21 = vadd.f32 %v555_v17, %v1731_v0  ;;  %v1197_v22 = vpop.f32.mrb[3].mxu1  ;;  %v1746_v23 = vadd.f32 %v553_v27, %v1591_v38 }
 0x1d4   :  { %675 = vadd.xlane.f32.xlu1 %v1746_v23  ;;  %v1750_v30 = vadd.f32 %v556_v21, %v1595_v42 }
 0x1d7   :  { %v560_v34 = vpop.f32.mrb[4].mxu1 }
 0x1d8   :  { %v561_v24 = vadd.f32 %v560_v34, %v1731_v0  ;;  %677 = vadd.xlane.f32.xlu1 %v1750_v30  ;;  %v1200_v26 = vpop.f32.mrb[5].mxu1 }
 0x1d9   :  { %v563_v33 = vpop.f32.mrb[6].mxu1 }
 0x1da   :  { %v564_v35 = vadd.f32 %v563_v33, %v1731_v0  ;;  %v1201_v36 = vpop.f32.mrb[7].mxu1  ;;  %v1756_v37 = vadd.f32 %v561_v24, %v1599_v49 }
 0x1dc   :  { %679 = vadd.xlane.f32.xlu0 %v1756_v37  ;;  %v1760_v38 = vadd.f32 %v564_v35, %v1605_v56 }
 0x1de   :  { %681 = vadd.xlane.f32.xlu1 %v1760_v38 }
 0x1df   :  { %v568_v42 = vpop.f32.mrb[8].mxu1 }
 0x1e0   :  { %v569_v39 = vadd.f32 %v568_v42, %v1731_v0  ;;  %v1204_v40 = vpop.f32.mrb[9].mxu1 }
 0x1e1   :  { %v571_v28 = vpop.f32.mrb[10].mxu1 }
 0x1e2   :  { %v572_v43 = vadd.f32 %v571_v28, %v1731_v0  ;;  %v1205_v45 = vpop.f32.mrb[11].mxu1  ;;  %v1766_v47 = vadd.f32 %v569_v39, %v1609_v3 }
 0x1e4   :  { %683 = vadd.xlane.f32.xlu0 %v1766_v47  ;;  %v1770_v49 = vadd.f32 %v572_v43, %v1615_v10 }
 0x1e6   :  { %685 = vadd.xlane.f32.xlu1 %v1770_v49 }
 0x1e7   :  { %v576_v56 = vpop.f32.mrb[12].mxu1 }
 0x1e8   :  { %v577_v48 = vadd.f32 %v576_v56, %v1731_v0  ;;  %v1208_v50 = vpop.f32.mrb[13].mxu1 }
 0x1e9   :  { %v579_v51 = vpop.f32.mrb[14].mxu1 }
 0x1ea   :  { %v580_v53 = vadd.f32 %v579_v51, %v1731_v0  ;;  %v1209_v54 = vpop.f32.mrb[15].mxu1  ;;  %v1776_v57 = vadd.f32 %v577_v48, %v1619_v20 }
 0x1ec   :  { %687 = vadd.xlane.f32.xlu0 %v1776_v57  ;;  %v1780_v3 = vadd.f32 %v580_v53, %v1627_v31 }
 0x1ee   :  { %689 = vadd.xlane.f32.xlu1 %v1780_v3 }
 0x1ef   :  { %v584_v10 = vpop.f32.mrb[16].mxu1 }
 0x1f0   :  { %v585_v59 = vadd.f32 %v584_v10, %v1731_v0  ;;  %v1212_v60 = vpop.f32.mrb[17].mxu1 }
 0x1f1   :  { %v587_v61 = vpop.f32.mrb[18].mxu1 }
 0x1f2   :  { %v588_v62 = vadd.f32 %v587_v61, %v1731_v0  ;;  %v1213_v2 = vpop.f32.mrb[19].mxu1  ;;  %v1786_v6 = vadd.f32 %v585_v59, %v1631_v44 }
 0x1f4   :  { %691 = vadd.xlane.f32.xlu0 %v1786_v6  ;;  %v1790_v20 = vadd.f32 %v588_v62, %v1639_v52 }
 0x1f6   :  { %693 = vadd.xlane.f32.xlu1 %v1790_v20 }
 0x1f7   :  { %v592_v31 = vpop.f32.mrb[20].mxu1 }
 0x1f8   :  { %v593_v7 = vadd.f32 %v592_v31, %v1731_v0  ;;  %v1216_v9 = vpop.f32.mrb[21].mxu1 }
 0x1f9   :  { %v595_v11 = vpop.f32.mrb[22].mxu1 }
 0x1fa   :  { %v596_v12 = vadd.f32 %v595_v11, %v1731_v0  ;;  %v1217_v15 = vpop.f32.mrb[23].mxu1  ;;  %v1796_v27 = vadd.f32 %v593_v7, %v1643_v63 }
 0x1fc   :  { %695 = vadd.xlane.f32.xlu0 %v1796_v27  ;;  %v1800_v44 = vadd.f32 %v596_v12, %v1651_v8 }
 0x1fe   :  { %697 = vadd.xlane.f32.xlu1 %v1800_v44 }
 0x1ff   :  { %v600_v52 = vpop.f32.mrb[24].mxu1 }
 0x200   :  { %v601_v16 = vadd.f32 %v600_v52, %v1731_v0  ;;  %v1220_v17 = vpop.f32.mrb[25].mxu1 }
 0x201   :  { %v603_v21 = vpop.f32.mrb[26].mxu1 }
 0x202   :  { %v604_v22 = vadd.f32 %v603_v21, %v1731_v0  ;;  %v1221_v34 = vpop.f32.mrb[27].mxu1  ;;  %v1806_v24 = vadd.f32 %v601_v16, %v1655_v19 }
 0x204   :  { %699 = vadd.xlane.f32.xlu0 %v1806_v24  ;;  %v1810_v63 = vadd.f32 %v604_v22, %v1663_v32 }
 0x206   :  { %701 = vadd.xlane.f32.xlu1 %v1810_v63 }
 0x207   :  { %v608_v8 = vpop.f32.mrb[28].mxu1 }
 0x208   :  { %v609_v26 = vadd.f32 %v608_v8, %v1731_v0  ;;  %v1224_v33 = vpop.f32.mrb[29].mxu1 }
 0x209   :  { %v611_v35 = vpop.f32.mrb[30].mxu1 }
 0x20a   :  { %v612_v36 = vadd.f32 %v611_v35, %v1731_v0  ;;  %v1225_v42 = vpop.f32.mrb[31].mxu1  ;;  %v1816_v39 = vadd.f32 %v609_v26, %v1667_v46 }
 0x20c   :  { %703 = vadd.xlane.f32.xlu0 %v1816_v39  ;;  %v1820_v19 = vadd.f32 %v612_v36, %v1675_v55 }
 0x20e   :  { %705 = vadd.xlane.f32.xlu1 %v1820_v19 }
 0x20f   :  { %v616_v32 = vpop.f32.mrb[32].mxu1 }
 0x210   :  { %v617_v40 = vadd.f32 %v616_v32, %v1731_v0  ;;  %v1228_v28 = vpop.f32.mrb[33].mxu1 }
 0x211   :  { %v619_v43 = vpop.f32.mrb[34].mxu1 }
 0x212   :  { %v620_v45 = vadd.f32 %v619_v43, %v1731_v0  ;;  %v1229_v56 = vpop.f32.mrb[35].mxu1  ;;  %v1826_v48 = vadd.f32 %v617_v40, %v1679_v5 }
 0x214   :  { %707 = vadd.xlane.f32.xlu0 %v1826_v48  ;;  %v1830_v46 = vadd.f32 %v620_v45, %v1687_v14 }
 0x216   :  { %709 = vadd.xlane.f32.xlu1 %v1830_v46 }
 0x217   :  { %v624_v55 = vpop.f32.mrb[36].mxu1 }
 0x218   :  { %v625_v50 = vadd.f32 %v624_v55, %v1731_v0  ;;  %v1232_v51 = vpop.f32.mrb[37].mxu1 }
 0x219   :  { %v627_v53 = vpop.f32.mrb[38].mxu1 }
 0x21a   :  { %v628_v54 = vadd.f32 %v627_v53, %v1731_v0  ;;  %v1233_v10 = vpop.f32.mrb[39].mxu1  ;;  %v1836_v59 = vadd.f32 %v625_v50, %v1691_v29 }
 0x21c   :  { %711 = vadd.xlane.f32.xlu0 %v1836_v59  ;;  %v1840_v5 = vadd.f32 %v628_v54, %v1699_v41 }
 0x21e   :  { %713 = vadd.xlane.f32.xlu1 %v1840_v5 }
 0x21f   :  { %v632_v14 = vpop.f32.mrb[40].mxu1 }
 0x220   :  { %v633_v60 = vadd.f32 %v632_v14, %v1731_v0  ;;  %v1236_v61 = vpop.f32.mrb[41].mxu1 }
 0x221   :  { %v635_v62 = vpop.f32.mrb[42].mxu1 }
 0x222   :  { %v636_v2 = vadd.f32 %v635_v62, %v1731_v0  ;;  %v1237_v31 = vpop.f32.mrb[43].mxu1  ;;  %v1846_v7 = vadd.f32 %v633_v60, %v1703_v58 }
 0x224   :  { %715 = vadd.xlane.f32.xlu0 %v1846_v7  ;;  %v1850_v29 = vadd.f32 %v636_v2, %v1711_v4 }
 0x226   :  { %717 = vadd.xlane.f32.xlu1 %v1850_v29 }
 0x227   :  { %v640_v41 = vpop.f32.mrb[44].mxu1 }
 0x228   :  { %v641_v9 = vadd.f32 %v640_v41, %v1731_v0  ;;  %v1240_v11 = vpop.f32.mrb[45].mxu1 }
 0x229   :  { %v643_v12 = vpop.f32.mrb[46].mxu1 }
 0x22a   :  { %v1241_v15 = vpop.f32.mrb[47].mxu1  ;;  %v1855_v52 = vadd.f32 %v641_v9, %v1715_v18 }
 0x22c   :  { %719 = vadd.xlane.f32.xlu0 %v1855_v52 }
 0x259   :  { %v672_v58 = vpop.xlane.xlu0 %671 }
 0x25a   :  { %v722_v16 = vmul.f32 0.0078125, %v672_v58 }
 0x25c   :  { %v1859_v17 = vsub.f32 %v1736_v13, %v722_v16 }
 0x25d   :  { %v674_v4 = vpop.xlane.xlu0 %673 }
 0x25e   :  { %v723_v21 = vmul.f32 0.0078125, %v674_v4  ;;  %v772_v22 = vmul.f32 %v1859_v17, %v1859_v17 }
 0x260   :  { %v1864_v0 = vsub.f32 %v1740_v1, %v723_v21  ;;  %797 = vadd.xlane.f32.xlu1 %v772_v22 }
 0x261   :  { %v676_v34 = vpop.xlane.xlu1 %675 }
 0x262   :  { %v724_v8 = vmul.f32 0.0078125, %v676_v34  ;;  %v773_v18 = vmul.f32 %v1864_v0, %v1864_v0 }
 0x264   :  { %v1869_v26 = vsub.f32 %v1746_v23, %v724_v8  ;;  %799 = vadd.xlane.f32.xlu0 %v773_v18 }
 0x265   :  { %v678_v13 = vpop.xlane.xlu1 %677 }
 0x266   :  { %v725_v33 = vmul.f32 0.0078125, %v678_v13  ;;  %v774_v35 = vmul.f32 %v1869_v26, %v1869_v26 }
 0x268   :  { %v1874_v36 = vsub.f32 %v1750_v30, %v725_v33  ;;  %801 = vadd.xlane.f32.xlu1 %v774_v35 }
 0x269   :  { %v680_v1 = vpop.xlane.xlu0 %679 }
 0x26a   :  { %v726_v42 = vmul.f32 0.0078125, %v680_v1  ;;  %v775_v32 = vmul.f32 %v1874_v36, %v1874_v36 }
 0x26b   :  { %v682_v40 = vpop.xlane.xlu1 %681 }
 0x26c   :  { %v1879_v28 = vsub.f32 %v1756_v37, %v726_v42  ;;  %v727_v23 = vmul.f32 0.0078125, %v682_v40  ;;  %803 = vadd.xlane.f32.xlu0 %v775_v32 }
 0x26e   :  { %v1882_v43 = vsub.f32 %v1760_v38, %v727_v23  ;;  %v776_v45 = vmul.f32 %v1879_v28, %v1879_v28 }
 0x270   :  { %805 = vadd.xlane.f32.xlu1 %v776_v45  ;;  %v777_v30 = vmul.f32 %v1882_v43, %v1882_v43 }
 0x271   :  { %v684_v56 = vpop.xlane.xlu0 %683 }
 0x272   :  { %v728_v55 = vmul.f32 0.0078125, %v684_v56  ;;  %807 = vadd.xlane.f32.xlu0 %v777_v30 }
 0x273   :  { %v686_v50 = vpop.xlane.xlu1 %685 }
 0x274   :  { %v1889_v51 = vsub.f32 %v1766_v47, %v728_v55  ;;  %v729_v37 = vmul.f32 0.0078125, %v686_v50 }
 0x276   :  { %v1892_v53 = vsub.f32 %v1770_v49, %v729_v37  ;;  %v778_v38 = vmul.f32 %v1889_v51, %v1889_v51 }
 0x278   :  { %809 = vadd.xlane.f32.xlu1 %v778_v38  ;;  %v779_v54 = vmul.f32 %v1892_v53, %v1892_v53 }
 0x279   :  { %v688_v10 = vpop.xlane.xlu0 %687 }
 0x27a   :  { %v730_v14 = vmul.f32 0.0078125, %v688_v10  ;;  %811 = vadd.xlane.f32.xlu0 %v779_v54 }
 0x27b   :  { %v690_v60 = vpop.xlane.xlu1 %689 }
 0x27c   :  { %v1899_v61 = vsub.f32 %v1776_v57, %v730_v14  ;;  %v731_v47 = vmul.f32 0.0078125, %v690_v60 }
 0x27e   :  { %v1902_v62 = vsub.f32 %v1780_v3, %v731_v47  ;;  %v780_v49 = vmul.f32 %v1899_v61, %v1899_v61 }
 0x280   :  { %813 = vadd.xlane.f32.xlu1 %v780_v49  ;;  %v781_v2 = vmul.f32 %v1902_v62, %v1902_v62 }
 0x281   :  { %v692_v31 = vpop.xlane.xlu0 %691 }
 0x282   :  { %v732_v41 = vmul.f32 0.0078125, %v692_v31  ;;  %815 = vadd.xlane.f32.xlu0 %v781_v2 }
 0x283   :  { %v694_v9 = vpop.xlane.xlu1 %693 }
 0x284   :  { %v1909_v11 = vsub.f32 %v1786_v6, %v732_v41  ;;  %v733_v57 = vmul.f32 0.0078125, %v694_v9 }
 0x286   :  { %v1912_v12 = vsub.f32 %v1790_v20, %v733_v57  ;;  %v782_v3 = vmul.f32 %v1909_v11, %v1909_v11 }
 0x288   :  { %817 = vadd.xlane.f32.xlu1 %v782_v3  ;;  %v783_v15 = vmul.f32 %v1912_v12, %v1912_v12 }
 0x289   :  { %v696_v58 = vpop.xlane.xlu0 %695 }
 0x28a   :  { %v734_v16 = vmul.f32 0.0078125, %v696_v58  ;;  %819 = vadd.xlane.f32.xlu0 %v783_v15 }
 0x28b   :  { %v698_v4 = vpop.xlane.xlu1 %697 }
 0x28c   :  { %v1919_v21 = vsub.f32 %v1796_v27, %v734_v16  ;;  %v735_v6 = vmul.f32 0.0078125, %v698_v4 }
 0x28e   :  { %v1922_v22 = vsub.f32 %v1800_v44, %v735_v6  ;;  %v784_v20 = vmul.f32 %v1919_v21, %v1919_v21 }
 0x290   :  { %821 = vadd.xlane.f32.xlu1 %v784_v20  ;;  %v785_v34 = vmul.f32 %v1922_v22, %v1922_v22 }
 0x291   :  { %v700_v8 = vpop.xlane.xlu0 %699 }
 0x292   :  { %v736_v18 = vmul.f32 0.0078125, %v700_v8  ;;  %823 = vadd.xlane.f32.xlu0 %v785_v34 }
 0x293   :  { %v702_v13 = vpop.xlane.xlu1 %701 }
 0x294   :  { %v1929_v33 = vsub.f32 %v1806_v24, %v736_v18  ;;  %v737_v27 = vmul.f32 0.0078125, %v702_v13 }
 0x296   :  { %v1932_v35 = vsub.f32 %v1810_v63, %v737_v27  ;;  %v786_v44 = vmul.f32 %v1929_v33, %v1929_v33 }
 0x298   :  { %825 = vadd.xlane.f32.xlu1 %v786_v44  ;;  %v787_v1 = vmul.f32 %v1932_v35, %v1932_v35  ;;  %v949_v44 = vsub.s32 2, %v1571_v25 }
 0x299   :  { %v704_v42 = vpop.xlane.xlu0 %703 }
 0x29a   :  { %v738_v32 = vmul.f32 0.0078125, %v704_v42  ;;  %827 = vadd.xlane.f32.xlu0 %v787_v1 }
 0x29b   :  { %v706_v40 = vpop.xlane.xlu1 %705 }
 0x29c   :  { %v1939_v23 = vsub.f32 %v1816_v39, %v738_v32  ;;  %v739_v24 = vmul.f32 0.0078125, %v706_v40  ;;  %v1386_v40 = vld [vmem:[%s2082_s3] sm:$0xf]  ;;  %s1413_s3 = smov [#allocation2]  }
 0x29d   :  { %s1035_s9 = sshll.u32 %s1413_s3, 4  ;;  %s1036_s9 = int_to_ptr.vmem [resolvable:$true] %s1035_s9 }
 0x29e   :  { %v1942_v45 = vsub.f32 %v1820_v19, %v739_v24  ;;  %v788_v63 = vmul.f32 %v1939_v23, %v1939_v23  ;;  %v1988_v24 = vrot.slane %v1386_v40, %v949_v44  ;;  %s1387_s10 = scalar_lea.vmem %s1036_s9, 3200  ;;  %p1392_p1 = scmp.lt.s32.totalorder %s1036_s9, %s1036_s9 }
 0x29f   :  { %p1388_p0 = scmp.ne.s32.totalorder %s1036_s9, %s1387_s10  ;;  %p1393_p2 = scmp.lt.s32.totalorder %s1387_s10, %s1387_s10 }
 0x2a0   :  { %829 = vadd.xlane.f32.xlu1 %v788_v63  ;;  %v789_v30 = vmul.f32 %v1942_v45, %v1942_v45 }
 0x2a1   :  { %v708_v56 = vpop.xlane.xlu0 %707  ;;  %p1394_p3 = por %p1393_p2, %p1392_p1 }
 0x2a2   :  { %v740_v55 = vmul.f32 0.0078125, %v708_v56  ;;  %831 = vadd.xlane.f32.xlu0 %v789_v30 }
 0x2a3   :  { %v710_v50 = vpop.xlane.xlu1 %709  ;;  %p1395_p4 = pnand %p1394_p3, %p1388_p0 }
 0x2a4   :  { %v1949_v37 = vsub.f32 %v1826_v48, %v740_v55  ;;  %v741_v39 = vmul.f32 0.0078125, %v710_v50 }
 0x2a6   :  { %v1952_v38 = vsub.f32 %v1830_v46, %v741_v39  ;;  %v790_v19 = vmul.f32 %v1949_v37, %v1949_v37 }
 0x2a8   :  { %833 = vadd.xlane.f32.xlu1 %v790_v19  ;;  %v791_v54 = vmul.f32 %v1952_v38, %v1952_v38 }
 0x2a9   :  { %v712_v10 = vpop.xlane.xlu0 %711 }
 0x2aa   :  { %v742_v14 = vmul.f32 0.0078125, %v712_v10  ;;  %835 = vadd.xlane.f32.xlu0 %v791_v54 }
 0x2ab   :  { %v714_v60 = vpop.xlane.xlu1 %713 }
 0x2ac   :  { %v1959_v47 = vsub.f32 %v1836_v59, %v742_v14  ;;  %v743_v48 = vmul.f32 0.0078125, %v714_v60 }
 0x2ae   :  { %v1962_v49 = vsub.f32 %v1840_v5, %v743_v48  ;;  %v792_v46 = vmul.f32 %v1959_v47, %v1959_v47 }
 0x2b0   :  { %837 = vadd.xlane.f32.xlu1 %v792_v46  ;;  %v793_v2 = vmul.f32 %v1962_v49, %v1962_v49 }
 0x2b1   :  { %v716_v31 = vpop.xlane.xlu0 %715 }
 0x2b2   :  { %v744_v41 = vmul.f32 0.0078125, %v716_v31  ;;  %839 = vadd.xlane.f32.xlu0 %v793_v2 }
 0x2b3   :  { %v718_v9 = vpop.xlane.xlu1 %717 }
 0x2b4   :  { %v1969_v57 = vsub.f32 %v1846_v7, %v744_v41  ;;  %v745_v59 = vmul.f32 0.0078125, %v718_v9 }
 0x2b6   :  { %v1972_v3 = vsub.f32 %v1850_v29, %v745_v59  ;;  %v794_v5 = vmul.f32 %v1969_v57, %v1969_v57 }
 0x2b8   :  { %841 = vadd.xlane.f32.xlu1 %v794_v5  ;;  %v795_v15 = vmul.f32 %v1972_v3, %v1972_v3 }
 0x2b9   :  { %v720_v58 = vpop.xlane.xlu0 %719 }
 0x2ba   :  { %v746_v16 = vmul.f32 0.0078125, %v720_v58  ;;  %843 = vadd.xlane.f32.xlu0 %v795_v15 }
 0x2bc   :  { %v1979_v4 = vsub.f32 %v1855_v52, %v746_v16  ;;  %v978_v52 = vsub.s32 3, %v1571_v25 }
 0x2be   :  { %v796_v7 = vmul.f32 %v1979_v4, %v1979_v4  ;;  %v1990_v56 = vrot.slane %v1386_v40, %v978_v52 }
 0x2c0   :  { %845 = vadd.xlane.f32.xlu1 %v796_v7 }
 0x2ed   :  { %v798_v6 = vpop.xlane.xlu1 %797 }
 0x2ee   :  { %v847_v29 = vmul.f32 0.0078125, %v798_v6 }
 0x2f0   :  { %v872_v20 = vadd.f32 1e-05, %v847_v29 }
 0x2f1   :  { %v800_v34 = vpop.xlane.xlu0 %799 }
 0x2f2   :  { %1336 = vrsqrt.f32 %v872_v20  ;;  %v848_v8 = vmul.f32 0.0078125, %v800_v34 }
 0x2f4   :  { %v873_v18 = vadd.f32 1e-05, %v848_v8 }
 0x2f5   :  { %v802_v13 = vpop.xlane.xlu1 %801 }
 0x2f6   :  { %1338 = vrsqrt.f32 %v873_v18  ;;  %v849_v27 = vmul.f32 0.0078125, %v802_v13 }
 0x2f8   :  { %v874_v1 = vadd.f32 1e-05, %v849_v27 }
 0x2f9   :  { %v804_v42 = vpop.xlane.xlu0 %803 }
 0x2fa   :  { %1340 = vrsqrt.f32 %v874_v1  ;;  %v850_v32 = vmul.f32 0.0078125, %v804_v42 }
 0x2fc   :  { %v1337_v63 = vpop.eup %1336  ;;  %v875_v30 = vadd.f32 1e-05, %v850_v32 }
 0x2fd   :  { %v922_v55 = vmul.f32 %v1337_v63, %v1859_v17  ;;  %v806_v50 = vpop.xlane.xlu1 %805 }
 0x2fe   :  { %1342 = vrsqrt.f32 %v875_v30  ;;  %v851_v39 = vmul.f32 0.0078125, %v806_v50 }
 0x2ff   :  { %v951_v25 = vmul.f32 %v1988_v24, %v922_v55  ;;  %v808_v19 = vpop.xlane.xlu0 %807 }
 0x300   :  { %v1339_v54 = vpop.eup %1338  ;;  %v876_v10 = vadd.f32 1e-05, %v851_v39  ;;  %v852_v14 = vmul.f32 0.0078125, %v808_v19 }
 0x301   :  { %v980_v60 = vadd.f32 %v1990_v56, %v951_v25  ;;  %v923_v48 = vmul.f32 %v1339_v54, %v1864_v0 }
 0x302   :  { %1344 = vrsqrt.f32 %v876_v10  ;;  %v877_v46 = vadd.f32 1e-05, %v852_v14 }
 0x303   :  { %1005 = vst [vmem:[#allocation2] sm:$0xff] %v980_v60  ;;  %v952_v2 = vmul.f32 %v1988_v24, %v923_v48 }
 0x304   :  { %v1341_v31 = vpop.eup %1340  ;;  %1346 = vrsqrt.f32 %v877_v46 }
 0x305   :  { %v981_v17 = vadd.f32 %v1990_v56, %v952_v2  ;;  %v924_v41 = vmul.f32 %v1341_v31, %v1869_v26  ;;  %v810_v9 = vpop.xlane.xlu1 %809 }
 0x306   :  { %v853_v59 = vmul.f32 0.0078125, %v810_v9 }
 0x307   :  { %1006 = vst [vmem:[#allocation2 + $0x8] sm:$0xff] %v981_v17  ;;  %v953_v5 = vmul.f32 %v1988_v24, %v924_v41  ;;  %v812_v15 = vpop.xlane.xlu0 %811 }
 0x308   :  { %v1343_v58 = vpop.eup %1342  ;;  %v878_v16 = vadd.f32 1e-05, %v853_v59  ;;  %v854_v0 = vmul.f32 0.0078125, %v812_v15 }
 0x309   :  { %v982_v7 = vadd.f32 %v1990_v56, %v953_v5  ;;  %v925_v6 = vmul.f32 %v1343_v58, %v1874_v36 }
 0x30a   :  { %1348 = vrsqrt.f32 %v878_v16  ;;  %v879_v29 = vadd.f32 1e-05, %v854_v0 }
 0x30b   :  { %1007 = vst [vmem:[#allocation2 + $0x10] sm:$0xff] %v982_v7  ;;  %v954_v20 = vmul.f32 %v1988_v24, %v925_v6 }
 0x30c   :  { %v1345_v34 = vpop.eup %1344  ;;  %1350 = vrsqrt.f32 %v879_v29 }
 0x30d   :  { %v983_v26 = vadd.f32 %v1990_v56, %v954_v20  ;;  %v926_v8 = vmul.f32 %v1345_v34, %v1879_v28  ;;  %v814_v18 = vpop.xlane.xlu1 %813 }
 0x30e   :  { %v1347_v13 = vpop.eup %1346  ;;  %v855_v27 = vmul.f32 0.0078125, %v814_v18 }
 0x30f   :  { %1008 = vst [vmem:[#allocation2 + $0x18] sm:$0xff] %v983_v26  ;;  %v955_v44 = vmul.f32 %v1988_v24, %v926_v8  ;;  %v927_v1 = vmul.f32 %v1347_v13, %v1882_v43  ;;  %v816_v36 = vpop.xlane.xlu0 %815 }
 0x310   :  { %v880_v52 = vadd.f32 1e-05, %v855_v27  ;;  %v856_v42 = vmul.f32 0.0078125, %v816_v36 }
 0x311   :  { %v984_v32 = vadd.f32 %v1990_v56, %v955_v44  ;;  %v956_v40 = vmul.f32 %v1988_v24, %v927_v1 }
 0x312   :  { %1352 = vrsqrt.f32 %v880_v52  ;;  %v881_v63 = vadd.f32 1e-05, %v856_v42 }
 0x313   :  { %1009 = vst [vmem:[#allocation2 + $0x20] sm:$0xff] %v984_v32  ;;  %v985_v28 = vadd.f32 %v1990_v56, %v956_v40 }
 0x314   :  { %v1349_v30 = vpop.eup %1348  ;;  %1354 = vrsqrt.f32 %v881_v63 }
 0x315   :  { %1010 = vst [vmem:[#allocation2 + $0x28] sm:$0xff] %v985_v28  ;;  %v928_v55 = vmul.f32 %v1349_v30, %v1889_v51  ;;  %v818_v50 = vpop.xlane.xlu1 %817 }
 0x316   :  { %v1351_v39 = vpop.eup %1350  ;;  %v857_v43 = vmul.f32 0.0078125, %v818_v50 }
 0x317   :  { %v957_v25 = vmul.f32 %v1988_v24, %v928_v55  ;;  %v929_v19 = vmul.f32 %v1351_v39, %v1892_v53  ;;  %v820_v54 = vpop.xlane.xlu0 %819 }
 0x318   :  { %v882_v10 = vadd.f32 1e-05, %v857_v43  ;;  %v858_v14 = vmul.f32 0.0078125, %v820_v54 }
 0x319   :  { %v986_v60 = vadd.f32 %v1990_v56, %v957_v25  ;;  %v958_v48 = vmul.f32 %v1988_v24, %v929_v19 }
 0x31a   :  { %1356 = vrsqrt.f32 %v882_v10  ;;  %v883_v46 = vadd.f32 1e-05, %v858_v14 }
 0x31b   :  { %1011 = vst [vmem:[#allocation2 + $0x30] sm:$0xff] %v986_v60  ;;  %v987_v2 = vadd.f32 %v1990_v56, %v958_v48 }
 0x31c   :  { %v1353_v51 = vpop.eup %1352  ;;  %1358 = vrsqrt.f32 %v883_v46 }
 0x31d   :  { %1012 = vst [vmem:[#allocation2 + $0x38] sm:$0xff] %v987_v2  ;;  %v930_v31 = vmul.f32 %v1353_v51, %v1899_v61  ;;  %v822_v17 = vpop.xlane.xlu1 %821 }
 0x31e   :  { %v1355_v41 = vpop.eup %1354  ;;  %v859_v53 = vmul.f32 0.0078125, %v822_v17 }
 0x31f   :  { %v959_v9 = vmul.f32 %v1988_v24, %v930_v31  ;;  %v931_v59 = vmul.f32 %v1355_v41, %v1902_v62  ;;  %v824_v5 = vpop.xlane.xlu0 %823 }
 0x320   :  { %v884_v15 = vadd.f32 1e-05, %v859_v53  ;;  %v860_v58 = vmul.f32 0.0078125, %v824_v5 }
 0x321   :  { %v988_v16 = vadd.f32 %v1990_v56, %v959_v9  ;;  %v960_v0 = vmul.f32 %v1988_v24, %v931_v59 }
 0x322   :  { %1360 = vrsqrt.f32 %v884_v15  ;;  %v885_v7 = vadd.f32 1e-05, %v860_v58 }
 0x323   :  { %1013 = vst [vmem:[#allocation2 + $0x40] sm:$0xff] %v988_v16  ;;  %v989_v6 = vadd.f32 %v1990_v56, %v960_v0 }
 0x324   :  { %v1357_v61 = vpop.eup %1356  ;;  %1362 = vrsqrt.f32 %v885_v7 }
 0x325   :  { %1014 = vst [vmem:[#allocation2 + $0x48] sm:$0xff] %v989_v6  ;;  %v932_v29 = vmul.f32 %v1357_v61, %v1909_v11  ;;  %v826_v20 = vpop.xlane.xlu1 %825 }
 0x326   :  { %v1359_v34 = vpop.eup %1358  ;;  %v861_v62 = vmul.f32 0.0078125, %v826_v20 }
 0x327   :  { %v961_v26 = vmul.f32 %v1988_v24, %v932_v29  ;;  %v933_v8 = vmul.f32 %v1359_v34, %v1912_v12  ;;  %v828_v18 = vpop.xlane.xlu0 %827 }
 0x328   :  { %v886_v13 = vadd.f32 1e-05, %v861_v62  ;;  %v862_v27 = vmul.f32 0.0078125, %v828_v18 }
 0x329   :  { %v990_v44 = vadd.f32 %v1990_v56, %v961_v26  ;;  %v962_v1 = vmul.f32 %v1988_v24, %v933_v8 }
 0x32a   :  { %1364 = vrsqrt.f32 %v886_v13  ;;  %v887_v36 = vadd.f32 1e-05, %v862_v27 }
 0x32b   :  { %1015 = vst [vmem:[#allocation2 + $0x50] sm:$0xff] %v990_v44  ;;  %v991_v52 = vadd.f32 %v1990_v56, %v962_v1 }
 0x32c   :  { %v1361_v11 = vpop.eup %1360  ;;  %1366 = vrsqrt.f32 %v887_v36 }
 0x32d   :  { %1016 = vst [vmem:[#allocation2 + $0x58] sm:$0xff] %v991_v52  ;;  %v934_v42 = vmul.f32 %v1361_v11, %v1919_v21  ;;  %v830_v32 = vpop.xlane.xlu1 %829 }
 0x32e   :  { %v1363_v40 = vpop.eup %1362  ;;  %v863_v12 = vmul.f32 0.0078125, %v830_v32 }
 0x32f   :  { %v963_v63 = vmul.f32 %v1988_v24, %v934_v42  ;;  %v935_v28 = vmul.f32 %v1363_v40, %v1922_v22  ;;  %v832_v30 = vpop.xlane.xlu0 %831 }
 0x330   :  { %v888_v55 = vadd.f32 1e-05, %v863_v12  ;;  %v864_v50 = vmul.f32 0.0078125, %v832_v30 }
 0x331   :  { %v992_v39 = vadd.f32 %v1990_v56, %v963_v63  ;;  %v964_v43 = vmul.f32 %v1988_v24, %v935_v28 }
 0x332   :  { %1368 = vrsqrt.f32 %v888_v55  ;;  %v889_v25 = vadd.f32 1e-05, %v864_v50 }
 0x333   :  { %1017 = vst [vmem:[#allocation2 + $0x60] sm:$0xff] %v992_v39  ;;  %v993_v19 = vadd.f32 %v1990_v56, %v964_v43 }
 0x334   :  { %v1365_v21 = vpop.eup %1364  ;;  %1370 = vrsqrt.f32 %v889_v25 }
 0x335   :  { %1018 = vst [vmem:[#allocation2 + $0x68] sm:$0xff] %v993_v19  ;;  %v936_v54 = vmul.f32 %v1365_v21, %v1929_v33  ;;  %v834_v10 = vpop.xlane.xlu1 %833 }
 0x336   :  { %v1367_v14 = vpop.eup %1366  ;;  %v865_v22 = vmul.f32 0.0078125, %v834_v10 }
 0x337   :  { %v965_v60 = vmul.f32 %v1988_v24, %v936_v54  ;;  %v937_v48 = vmul.f32 %v1367_v14, %v1932_v35  ;;  %v836_v46 = vpop.xlane.xlu0 %835 }
 0x338   :  { %v890_v2 = vadd.f32 1e-05, %v865_v22  ;;  %v866_v51 = vmul.f32 0.0078125, %v836_v46 }
 0x339   :  { %v994_v31 = vadd.f32 %v1990_v56, %v965_v60  ;;  %v966_v17 = vmul.f32 %v1988_v24, %v937_v48 }
 0x33a   :  { %1372 = vrsqrt.f32 %v890_v2  ;;  %v891_v41 = vadd.f32 1e-05, %v866_v51 }
 0x33b   :  { %1019 = vst [vmem:[#allocation2 + $0x70] sm:$0xff] %v994_v31  ;;  %v995_v53 = vadd.f32 %v1990_v56, %v966_v17 }
 0x33c   :  { %v1369_v33 = vpop.eup %1368  ;;  %1374 = vrsqrt.f32 %v891_v41 }
 0x33d   :  { %1020 = vst [vmem:[#allocation2 + $0x78] sm:$0xff] %v995_v53  ;;  %v938_v9 = vmul.f32 %v1369_v33, %v1939_v23  ;;  %v838_v59 = vpop.xlane.xlu1 %837 }
 0x33e   :  { %v1371_v5 = vpop.eup %1370  ;;  %v867_v35 = vmul.f32 0.0078125, %v838_v59 }
 0x33f   :  { %v967_v15 = vmul.f32 %v1988_v24, %v938_v9  ;;  %v939_v58 = vmul.f32 %v1371_v5, %v1942_v45  ;;  %v840_v16 = vpop.xlane.xlu0 %839 }
 0x340   :  { %v892_v0 = vadd.f32 1e-05, %v867_v35  ;;  %v868_v7 = vmul.f32 0.0078125, %v840_v16 }
 0x341   :  { %v996_v6 = vadd.f32 %v1990_v56, %v967_v15  ;;  %v968_v61 = vmul.f32 %v1988_v24, %v939_v58 }
 0x342   :  { %1376 = vrsqrt.f32 %v892_v0  ;;  %v893_v29 = vadd.f32 1e-05, %v868_v7 }
 0x343   :  { %1021 = vst [vmem:[#allocation2 + $0x80] sm:$0xff] %v996_v6  ;;  %v997_v20 = vadd.f32 %v1990_v56, %v968_v61 }
 0x344   :  { %v1373_v23 = vpop.eup %1372  ;;  %1378 = vrsqrt.f32 %v893_v29 }
 0x345   :  { %1022 = vst [vmem:[#allocation2 + $0x88] sm:$0xff] %v997_v20  ;;  %v940_v34 = vmul.f32 %v1373_v23, %v1949_v37  ;;  %v842_v62 = vpop.xlane.xlu1 %841 }
 0x346   :  { %v1375_v26 = vpop.eup %1374  ;;  %v869_v45 = vmul.f32 0.0078125, %v842_v62 }
 0x347   :  { %v969_v8 = vmul.f32 %v1988_v24, %v940_v34  ;;  %v941_v18 = vmul.f32 %v1375_v26, %v1952_v38  ;;  %v844_v13 = vpop.xlane.xlu0 %843 }
 0x348   :  { %v894_v27 = vadd.f32 1e-05, %v869_v45  ;;  %v870_v44 = vmul.f32 0.0078125, %v844_v13 }
 0x349   :  { %v998_v1 = vadd.f32 %v1990_v56, %v969_v8  ;;  %v970_v36 = vmul.f32 %v1988_v24, %v941_v18 }
 0x34a   :  { %1380 = vrsqrt.f32 %v894_v27  ;;  %v895_v52 = vadd.f32 1e-05, %v870_v44 }
 0x34b   :  { %1023 = vst [vmem:[#allocation2 + $0x90] sm:$0xff] %v998_v1  ;;  %v999_v11 = vadd.f32 %v1990_v56, %v970_v36 }
 0x34c   :  { %v1377_v37 = vpop.eup %1376  ;;  %1382 = vrsqrt.f32 %v895_v52 }
 0x34d   :  { %1024 = vst [vmem:[#allocation2 + $0x98] sm:$0xff] %v999_v11  ;;  %v942_v42 = vmul.f32 %v1377_v37, %v1959_v47  ;;  %v846_v32 = vpop.xlane.xlu1 %845 }
 0x34e   :  { %v1379_v40 = vpop.eup %1378  ;;  %v871_v38 = vmul.f32 0.0078125, %v846_v32 }
 0x34f   :  { %v971_v12 = vmul.f32 %v1988_v24, %v942_v42  ;;  %v943_v63 = vmul.f32 %v1379_v40, %v1962_v49 }
 0x350   :  { %v896_v28 = vadd.f32 1e-05, %v871_v38 }
 0x351   :  { %v1000_v30 = vadd.f32 %v1990_v56, %v971_v12  ;;  %v972_v55 = vmul.f32 %v1988_v24, %v943_v63 }
 0x352   :  { %1384 = vrsqrt.f32 %v896_v28 }
 0x353   :  { %1025 = vst [vmem:[#allocation2 + $0xa0] sm:$0xff] %v1000_v30  ;;  %v1001_v50 = vadd.f32 %v1990_v56, %v972_v55 }
 0x354   :  { %v1381_v39 = vpop.eup %1380 }
 0x355   :  { %1026 = vst [vmem:[#allocation2 + $0xa8] sm:$0xff] %v1001_v50  ;;  %v944_v47 = vmul.f32 %v1381_v39, %v1969_v57 }
 0x356   :  { %v1383_v43 = vpop.eup %1382 }
 0x357   :  { %v973_v25 = vmul.f32 %v1988_v24, %v944_v47  ;;  %v945_v19 = vmul.f32 %v1383_v43, %v1972_v3 }
 0x359   :  { %v1002_v49 = vadd.f32 %v1990_v56, %v973_v25  ;;  %v974_v21 = vmul.f32 %v1988_v24, %v945_v19 }
 0x35b   :  { %1027 = vst [vmem:[#allocation2 + $0xb0] sm:$0xff] %v1002_v49  ;;  %v1003_v54 = vadd.f32 %v1990_v56, %v974_v21 }
 0x35c   :  { %v1385_v10 = vpop.eup %1384 }
 0x35d   :  { %1028 = vst [vmem:[#allocation2 + $0xb8] sm:$0xff] %v1003_v54  ;;  %v946_v14 = vmul.f32 %v1385_v10, %v1979_v4 }
 0x35f   :  { %v975_v57 = vmul.f32 %v1988_v24, %v946_v14 }
 0x361   :  { %v1004_v22 = vadd.f32 %v1990_v56, %v975_v57 }
 0x363   :  { %1029 = vst [vmem:[#allocation2 + $0xc0] sm:$0xff] %v1004_v22 }
 0x364   :  { %1398 = shalt.err (!%p1395_p4)
}
 0x365   :  { %s1399_s13 = scalar_lea.hbm %s2083_s4, 3200 }
 0x366   :  { %p1400_p5 = scmp.ne.s32.totalorder %s2083_s4, %s1399_s13  ;;  %p1403_p6 = scmp.lt.u32.totalorder %s1399_s13, %s2083_s4 }
 0x368   :  { %p1405_p7 = pnand %p1403_p6, %p1400_p5 }
 0x36a   :  { %1408 = shalt.err (!%p1405_p7)
}
 0x36b   :  { %s1414_s18 = smov 128   ;;  %s1415_s19 = smov 8  }
 0x36c   :  { %1041 = dma.vmem_to_hbm [thread:$0]  %s1036_s9, 3200, %s2083_s4, [#allocation3], %s1414_s18, %s1414_s18, %s1415_s19  }
 0x36d   :  { %1409 = dma.done.wait [#allocation3], 3200  }
 0x36e   :  { %1410 = vsyncadd [#allocation3], 4294964096 }
 0x36f   :  { %1045 = vsyncpa [#allocation3], 1 }

</bundles_post_ra>
